<compile_context>
chip_gen: v6e
topology: v6e:2x2x1
jax: 0.10.0
libtpu: 0.0.40
codegen_flags: <defaults>
</compile_context>

<pallas_src>
import jax
import jax.numpy as jnp
from jax.experimental import pallas as pl
from jax.experimental.pallas import tpu as pltpu

HIDDEN = 10  # fixed by the module definition


def _policy_kernel(xt_ref,
                   w1_ref, b1_ref,
                   w2_ref, b2_ref,
                   w3_ref, b3_ref,
                   w4_ref, b4_ref,
                   ot_ref):
    # xt tile: (S, TB) -- batch already on the 128-lane axis, so there is no
    # in-kernel transpose and every intermediate is lane-dense.
    xt = xt_ref[...].astype(jnp.float32)                                  # (S, TB)

    # Linear(S, 10) + ReLU      (W in PyTorch layout (out, in))
    h = jnp.dot(w1_ref[...], xt, preferred_element_type=jnp.float32) + b1_ref[...]
    h = jnp.maximum(h, 0.0)                                               # (10, TB)

    # Linear(10, 10) + ReLU
    h = jnp.dot(w2_ref[...], h, preferred_element_type=jnp.float32) + b2_ref[...]
    h = jnp.maximum(h, 0.0)

    # Linear(10, 10) + ReLU
    h = jnp.dot(w3_ref[...], h, preferred_element_type=jnp.float32) + b3_ref[...]
    h = jnp.maximum(h, 0.0)

    # Linear(10, A)
    s = jnp.dot(w4_ref[...], h, preferred_element_type=jnp.float32) + b4_ref[...]  # (A, TB)

    # Softmax over the action axis (axis=0 here == dim=1 of (batch, A)).
    # Exact divide: rows must sum to 1 for downstream log-prob/entropy use.
    m = jnp.max(s, axis=0, keepdims=True)                                 # (1, TB)
    e = jnp.exp(s - m)
    denom = jnp.sum(e, axis=0, keepdims=True)                             # (1, TB)
    ot_ref[...] = (e / denom).astype(ot_ref.dtype)


def _pick_batch_tile(batch, max_tile):
    """Return (tile, padded_batch).

    The lane (last) dim of the x / output blocks must be a multiple of 128
    unless the block spans the whole (padded) batch, so tiles are multiples of
    128 and ragged batches are padded up to a multiple of the tile.
    """
    max_tile = max(128, (int(max_tile) // 128) * 128)
    if batch <= max_tile:
        # Single block: block dims == full array dims is always legal.
        return batch, batch
    tb = max_tile
    padded = pl.cdiv(batch, tb) * tb
    return tb, padded


def policy_network_forward(x, params, *, max_batch_tile=8192,
                           dimension_semantics=("parallel",),
                           transpose_output=True):
    """x: (batch, state_dim) -> (batch, action_dim) softmax probabilities.

    Set transpose_output=False to receive the kernel-native lane-dense
    (action_dim, batch) slab and skip the wrapper transpose.
    """
    batch, state_dim = x.shape
    action_dim = params["w4"].shape[0]

    # Lane-dense x: (state_dim, batch).  If the producer can emit this layout
    # (and/or bf16) directly, this wrapper transpose disappears entirely.
    xt = x.T

    tb, padded = _pick_batch_tile(batch, max_batch_tile)
    if padded != batch:
        xt = jnp.pad(xt, ((0, 0), (0, padded - batch)))

    grid = (padded // tb,)

    def resident(arr):
        # Same block index every step -> fetched once, stays VMEM-resident.
        return pl.BlockSpec(arr.shape, lambda i: (0, 0))

    in_specs = [pl.BlockSpec((state_dim, tb), lambda i: (0, i))] + [
        resident(params[k])
        for k in ("w1", "b1", "w2", "b2", "w3", "b3", "w4", "b4")
    ]

    out_t = pl.pallas_call(
        _policy_kernel,
        out_shape=jax.ShapeDtypeStruct((action_dim, padded), jnp.float32),
        grid=grid,
        in_specs=in_specs,
        out_specs=pl.BlockSpec((action_dim, tb), lambda i: (0, i)),
        compiler_params=pltpu.CompilerParams(
            dimension_semantics=tuple(dimension_semantics)),
    )(
        xt,
        params["w1"], params["b1"],
        params["w2"], params["b2"],
        params["w3"], params["b3"],
        params["w4"], params["b4"],
    )

    if padded != batch:
        out_t = out_t[:, :batch]
    return out_t.T if transpose_output else out_t


def init_params(key, state_dim, action_dim):
    """Deterministic init matching the PyTorch module's layer shapes.

    Weights use PyTorch layout (out_features, in_features); biases are stored
    as (out_features, 1) columns so they broadcast along the lane/batch axis.
    """
    def linear(k, fan_in, fan_out):
        kw, kb = jax.random.split(k)
        bound = 1.0 / jnp.sqrt(float(fan_in))
        w = jax.random.uniform(kw, (fan_out, fan_in), jnp.float32, -bound, bound)
        b = jax.random.uniform(kb, (fan_out, 1), jnp.float32, -bound, bound)
        return w, b

    k1, k2, k3, k4 = jax.random.split(key, 4)
    w1, b1 = linear(k1, state_dim, HIDDEN)
    w2, b2 = linear(k2, HIDDEN, HIDDEN)
    w3, b3 = linear(k3, HIDDEN, HIDDEN)
    w4, b4 = linear(k4, HIDDEN, action_dim)
    return dict(w1=w1, b1=b1, w2=w2, b2=b2, w3=w3, b3=b3, w4=w4, b4=b4)


def _reference(x, p):
    h = jnp.maximum(x @ p["w1"].T + p["b1"].T, 0.0)
    h = jnp.maximum(h @ p["w2"].T + p["b2"].T, 0.0)
    h = jnp.maximum(h @ p["w3"].T + p["b3"].T, 0.0)
    s = h @ p["w4"].T + p["b4"].T
    return jax.nn.softmax(s, axis=1)


if __name__ == "__main__":
    key = jax.random.PRNGKey(0)
    k_x, k_p = jax.random.split(key)

    batch, state_dim, action_dim = 256, 16, 4
    x = jax.random.normal(k_x, (batch, state_dim), jnp.float32)
    params = init_params(k_p, state_dim, action_dim)

    # max_batch_tile=128 -> grid of 2 steps, exercising the batch pipeline.
    out = policy_network_forward(x, params, max_batch_tile=128)
    out = jax.block_until_ready(out)

    expected = _reference(x, params)
    assert out.shape == (batch, action_dim)
    # Exact softmax divide -> rows sum to 1 up to f32 rounding.
    assert jnp.allclose(jnp.sum(out, axis=1), 1.0, atol=1e-4)
    assert jnp.allclose(out, expected, atol=2e-3, rtol=2e-3)

    # Ragged batch (not a multiple of 128): exercises the pad-and-slice path.
    x2 = x[:200]
    out2 = policy_network_forward(x2, params, max_batch_tile=128)
    out2 = jax.block_until_ready(out2)
    assert out2.shape == (200, action_dim)
    assert jnp.allclose(jnp.sum(out2, axis=1), 1.0, atol=1e-4)
    assert jnp.allclose(out2, expected[:200], atol=2e-3, rtol=2e-3)

    print("KERNEL_OK")
</pallas_src>

<mosaic_0001>
module attributes {stable_mosaic.version = 11 : i64} {
  func.func @_policy_kernel(%arg0: i32, %arg1: memref<16x128xf32, #tpu.memory_space<vmem>>, %arg2: memref<10x16xf32, #tpu.memory_space<vmem>>, %arg3: memref<10x1xf32, #tpu.memory_space<vmem>>, %arg4: memref<10x10xf32, #tpu.memory_space<vmem>>, %arg5: memref<10x1xf32, #tpu.memory_space<vmem>>, %arg6: memref<10x10xf32, #tpu.memory_space<vmem>>, %arg7: memref<10x1xf32, #tpu.memory_space<vmem>>, %arg8: memref<4x10xf32, #tpu.memory_space<vmem>>, %arg9: memref<4x1xf32, #tpu.memory_space<vmem>>, %arg10: memref<4x128xf32, #tpu.memory_space<vmem>>) attributes {dimension_semantics = [#tpu.dimension_semantics<parallel>], iteration_bounds = array<i64: 2>, scalar_prefetch = 0 : i64, scratch_operands = 0 : i64, tpu.core_type = #tpu.core_type<tc>, window_params = [{transform_indices = @transform_0, window_bounds = array<i64: 16, 128>}, {pipeline_mode = #tpu.pipeline_mode<synchronous>, transform_indices = @transform_1, window_bounds = array<i64: 10, 16>}, {pipeline_mode = #tpu.pipeline_mode<synchronous>, transform_indices = @transform_2, window_bounds = array<i64: 10, 1>}, {pipeline_mode = #tpu.pipeline_mode<synchronous>, transform_indices = @transform_3, window_bounds = array<i64: 10, 10>}, {pipeline_mode = #tpu.pipeline_mode<synchronous>, transform_indices = @transform_4, window_bounds = array<i64: 10, 1>}, {pipeline_mode = #tpu.pipeline_mode<synchronous>, transform_indices = @transform_5, window_bounds = array<i64: 10, 10>}, {pipeline_mode = #tpu.pipeline_mode<synchronous>, transform_indices = @transform_6, window_bounds = array<i64: 10, 1>}, {pipeline_mode = #tpu.pipeline_mode<synchronous>, transform_indices = @transform_7, window_bounds = array<i64: 4, 10>}, {pipeline_mode = #tpu.pipeline_mode<synchronous>, transform_indices = @transform_8, window_bounds = array<i64: 4, 1>}, {transform_indices = @transform_9, window_bounds = array<i64: 4, 128>}]} {
    %c0 = arith.constant 0 : index
    %c0_0 = arith.constant 0 : index
    %0 = vector.load %arg1[%c0, %c0_0] : memref<16x128xf32, #tpu.memory_space<vmem>>, vector<16x128xf32>
    %c0_1 = arith.constant 0 : index
    %c0_2 = arith.constant 0 : index
    %1 = vector.load %arg2[%c0_1, %c0_2] : memref<10x16xf32, #tpu.memory_space<vmem>>, vector<10x16xf32>
    %cst = arith.constant dense<0.000000e+00> : vector<10x128xf32>
    %2 = tpu.matmul %1, %0, %cst {dimension_numbers = #tpu.dot_dimension_numbers<[1], [0], [0], [1], [0, 0, 1, 1], [], []>} : vector<10x16xf32>, vector<16x128xf32>, vector<10x128xf32> -> vector<10x128xf32>
    %c0_3 = arith.constant 0 : index
    %c0_4 = arith.constant 0 : index
    %3 = vector.load %arg3[%c0_3, %c0_4] : memref<10x1xf32, #tpu.memory_space<vmem>>, vector<10x1xf32>
    %4 = vector.broadcast %3 : vector<10x1xf32> to vector<10x128xf32>
    %5 = arith.addf %2, %4 : vector<10x128xf32>
    %cst_5 = arith.constant 0.000000e+00 : f32
    %6 = vector.broadcast %cst_5 : f32 to vector<10x128xf32>
    %7 = arith.maximumf %5, %6 : vector<10x128xf32>
    %c0_6 = arith.constant 0 : index
    %c0_7 = arith.constant 0 : index
    %8 = vector.load %arg4[%c0_6, %c0_7] : memref<10x10xf32, #tpu.memory_space<vmem>>, vector<10x10xf32>
    %cst_8 = arith.constant dense<0.000000e+00> : vector<10x128xf32>
    %9 = tpu.matmul %8, %7, %cst_8 {dimension_numbers = #tpu.dot_dimension_numbers<[1], [0], [0], [1], [0, 0, 1, 1], [], []>} : vector<10x10xf32>, vector<10x128xf32>, vector<10x128xf32> -> vector<10x128xf32>
    %c0_9 = arith.constant 0 : index
    %c0_10 = arith.constant 0 : index
    %10 = vector.load %arg5[%c0_9, %c0_10] : memref<10x1xf32, #tpu.memory_space<vmem>>, vector<10x1xf32>
    %11 = vector.broadcast %10 : vector<10x1xf32> to vector<10x128xf32>
    %12 = arith.addf %9, %11 : vector<10x128xf32>
    %cst_11 = arith.constant 0.000000e+00 : f32
    %13 = vector.broadcast %cst_11 : f32 to vector<10x128xf32>
    %14 = arith.maximumf %12, %13 : vector<10x128xf32>
    %c0_12 = arith.constant 0 : index
    %c0_13 = arith.constant 0 : index
    %15 = vector.load %arg6[%c0_12, %c0_13] : memref<10x10xf32, #tpu.memory_space<vmem>>, vector<10x10xf32>
    %cst_14 = arith.constant dense<0.000000e+00> : vector<10x128xf32>
    %16 = tpu.matmul %15, %14, %cst_14 {dimension_numbers = #tpu.dot_dimension_numbers<[1], [0], [0], [1], [0, 0, 1, 1], [], []>} : vector<10x10xf32>, vector<10x128xf32>, vector<10x128xf32> -> vector<10x128xf32>
    %c0_15 = arith.constant 0 : index
    %c0_16 = arith.constant 0 : index
    %17 = vector.load %arg7[%c0_15, %c0_16] : memref<10x1xf32, #tpu.memory_space<vmem>>, vector<10x1xf32>
    %18 = vector.broadcast %17 : vector<10x1xf32> to vector<10x128xf32>
    %19 = arith.addf %16, %18 : vector<10x128xf32>
    %cst_17 = arith.constant 0.000000e+00 : f32
    %20 = vector.broadcast %cst_17 : f32 to vector<10x128xf32>
    %21 = arith.maximumf %19, %20 : vector<10x128xf32>
    %c0_18 = arith.constant 0 : index
    %c0_19 = arith.constant 0 : index
    %22 = vector.load %arg8[%c0_18, %c0_19] : memref<4x10xf32, #tpu.memory_space<vmem>>, vector<4x10xf32>
    %cst_20 = arith.constant dense<0.000000e+00> : vector<4x128xf32>
    %23 = tpu.matmul %22, %21, %cst_20 {dimension_numbers = #tpu.dot_dimension_numbers<[1], [0], [0], [1], [0, 0, 1, 1], [], []>} : vector<4x10xf32>, vector<10x128xf32>, vector<4x128xf32> -> vector<4x128xf32>
    %c0_21 = arith.constant 0 : index
    %c0_22 = arith.constant 0 : index
    %24 = vector.load %arg9[%c0_21, %c0_22] : memref<4x1xf32, #tpu.memory_space<vmem>>, vector<4x1xf32>
    %25 = vector.broadcast %24 : vector<4x1xf32> to vector<4x128xf32>
    %26 = arith.addf %23, %25 : vector<4x128xf32>
    %cst_23 = arith.constant dense<0xFF800000> : vector<128xf32>
    %27 = vector.multi_reduction <maximumf>, %26, %cst_23 [0] : vector<4x128xf32> to vector<128xf32>
    %28 = vector.shape_cast %27 : vector<128xf32> to vector<1x128xf32>
    %29 = vector.broadcast %28 : vector<1x128xf32> to vector<4x128xf32>
    %30 = arith.subf %26, %29 : vector<4x128xf32>
    %31 = math.exp %30 : vector<4x128xf32>
    %cst_24 = arith.constant dense<0.000000e+00> : vector<128xf32>
    %32 = vector.multi_reduction <add>, %31, %cst_24 [0] : vector<4x128xf32> to vector<128xf32>
    %33 = vector.shape_cast %32 : vector<128xf32> to vector<1x128xf32>
    %34 = vector.broadcast %33 : vector<1x128xf32> to vector<4x128xf32>
    %35 = arith.divf %31, %34 : vector<4x128xf32>
    %c0_25 = arith.constant 0 : index
    %c0_26 = arith.constant 0 : index
    %36 = vector.load %arg10[%c0_25, %c0_26] : memref<4x128xf32, #tpu.memory_space<vmem>>, vector<4x128xf32>
    tpu.vector_store %arg10[%c0_25, %c0_26], %35 {strides = array<i32>} : memref<4x128xf32, #tpu.memory_space<vmem>>, vector<4x128xf32>,
    return
  }
  func.func @transform_0(%arg0: i32) -> (i32, i32) {
    %c0_i32 = arith.constant 0 : i32
    %c0_i32_0 = arith.constant 0 : i32
    return %c0_i32, %arg0 : i32, i32
  }
  func.func @transform_1(%arg0: i32) -> (i32, i32) {
    %c0_i32 = arith.constant 0 : i32
    %c0_i32_0 = arith.constant 0 : i32
    %c0_i32_1 = arith.constant 0 : i32
    return %c0_i32, %c0_i32_0 : i32, i32
  }
  func.func @transform_2(%arg0: i32) -> (i32, i32) {
    %c0_i32 = arith.constant 0 : i32
    %c0_i32_0 = arith.constant 0 : i32
    %c0_i32_1 = arith.constant 0 : i32
    return %c0_i32, %c0_i32_0 : i32, i32
  }
  func.func @transform_3(%arg0: i32) -> (i32, i32) {
    %c0_i32 = arith.constant 0 : i32
    %c0_i32_0 = arith.constant 0 : i32
    %c0_i32_1 = arith.constant 0 : i32
    return %c0_i32, %c0_i32_0 : i32, i32
  }
  func.func @transform_4(%arg0: i32) -> (i32, i32) {
    %c0_i32 = arith.constant 0 : i32
    %c0_i32_0 = arith.constant 0 : i32
    %c0_i32_1 = arith.constant 0 : i32
    return %c0_i32, %c0_i32_0 : i32, i32
  }
  func.func @transform_5(%arg0: i32) -> (i32, i32) {
    %c0_i32 = arith.constant 0 : i32
    %c0_i32_0 = arith.constant 0 : i32
    %c0_i32_1 = arith.constant 0 : i32
    return %c0_i32, %c0_i32_0 : i32, i32
  }
  func.func @transform_6(%arg0: i32) -> (i32, i32) {
    %c0_i32 = arith.constant 0 : i32
    %c0_i32_0 = arith.constant 0 : i32
    %c0_i32_1 = arith.constant 0 : i32
    return %c0_i32, %c0_i32_0 : i32, i32
  }
  func.func @transform_7(%arg0: i32) -> (i32, i32) {
    %c0_i32 = arith.constant 0 : i32
    %c0_i32_0 = arith.constant 0 : i32
    %c0_i32_1 = arith.constant 0 : i32
    return %c0_i32, %c0_i32_0 : i32, i32
  }
  func.func @transform_8(%arg0: i32) -> (i32, i32) {
    %c0_i32 = arith.constant 0 : i32
    %c0_i32_0 = arith.constant 0 : i32
    %c0_i32_1 = arith.constant 0 : i32
    return %c0_i32, %c0_i32_0 : i32, i32
  }
  func.func @transform_9(%arg0: i32) -> (i32, i32) {
    %c0_i32 = arith.constant 0 : i32
    %c0_i32_0 = arith.constant 0 : i32
    return %c0_i32, %arg0 : i32, i32
  }
}

</mosaic_0001>

<bundles_post_ra>
// kernel: tpu_custom_call.1
= control target key start
LH: loop header
LB: loop body
LE: loop exit
PB: predicated region body
PF: predicated region fallthrough
CT: control target
= control target key end

     0   :  { %14 = vsyncpa [#allocation4], 0  ;;  %s1326_s0 = inlined_call_operand.vmem [shape: f32[16,256], index: 0, kind: input, shape index: {}]   ;;  %s1327_s1 = inlined_call_operand.vmem [shape: f32[10,16], index: 1, kind: input, shape index: {}]   ;;  %s1328_s2 = inlined_call_operand.vmem [shape: f32[10,1], index: 2, kind: input, shape index: {}]   ;;  %s1329_s3 = inlined_call_operand.hbm [shape: f32[10,10], index: 3, kind: input, shape index: {}]   ;;  %s1330_s4 = inlined_call_operand.vmem [shape: f32[10,1], index: 4, kind: input, shape index: {}]   ;;  %s1331_s5 = inlined_call_operand.vmem [shape: f32[10,10], index: 5, kind: input, shape index: {}]   ;;  %s1332_s6 = inlined_call_operand.vmem [shape: f32[10,1], index: 6, kind: input, shape index: {}]   ;;  %s1333_s7 = inlined_call_operand.vmem [shape: f32[4,10], index: 7, kind: input, shape index: {}]   ;;  %s1334_s8 = inlined_call_operand.vmem [shape: f32[4,1], index: 8, kind: input, shape index: {}]   ;;  %s1335_s9 = inlined_call_operand.hbm [shape: f32[4,256], index: 9, kind: output, shape index: {}]  }
   0x1   :  { %15 = vsyncpa [#allocation5], 0 }
   0x2   :  { %17 = vsyncpa [#allocation5 + $0x1], 0  ;;  %s1159_s30 = smov 0   ;;  %s1161_s10 = smov 0  }
   0x3   :  { %s1163_s11 = smov 0   ;;  %s1165_s12 = smov 0  }
   0x4 LB: > { %s1180_s13 = sadd.s32 4294967295, %s1100_s12   ;;  %s882_s14 = sadd.s32 4294967294, %s1100_s12   ;;  %s1100_s12 = sphi %s1165_s12, %s1348_s12   ;;  %s1096_s11 = sphi %s1163_s11, %s1347_s11   ;;  %s1092_s10 = sphi %s1161_s10, %s1346_s10   ;;  %s1088_s30 = sphi %s1159_s30, %s1345_s30  }
   0x5   : > { %s1184_s15 = sadd.s32 1, %s1100_s12   ;;  %s30_s16 = sadd.s32 1, %s1096_s11 }
   0x6   : > { %s27_s17 = ssub.s32 %s1100_s12, %s1184_s15  ;;  %p37_p0 = scmp.ne.s32.totalorder %s1096_s11, %s1092_s10 }
   0x7   : > { %p28_p1 = scmp.eq.s32.totalorder %s27_s17, 0  ;;  %p38_p2 = scmp.eq.s32.totalorder %s1100_s12, 0 }
   0x8   : > { %p235_p3 = scmp.eq.s32.totalorder %s1180_s13, 1  ;;  %p240_p4 = scmp.ne.s32.totalorder %s1092_s10, %s1088_s30 }
   0x9   : > { %s1196_s18 = scalar_select %p28_p1, %s1096_s11, %s30_s16  }
   0xa   : > { %p1198_p5 = por %p38_p2, %p37_p0  ;;  %p1202_p6 = por %p235_p3, %p37_p0 }
   0xb   : > { %1337 = sst [smem:[#allocation9_spill]] %s1196_s18  ;;  %p241_p7 = scmp.eq.s32.totalorder %s882_s14, 1 }
   0xc   : > { %s1339_s20 = scalar_select %p1202_p6, 1, 0 }
   0xd   : > { %p883_p8 = scmp.ge.s32.totalorder %s1100_s12, 1  ;;  %p248_p9 = scmp.lt.s32.totalorder %s1100_s12, 3 }
   0xe   : > { %p1208_p10 = por %p241_p7, %p240_p4  ;;  %p963_p11 = scmp.eq.s32.totalorder %s1180_s13, 0 }
   0xf   : > { %p1213_p12 = pnand %p883_p8, %p248_p9  ;;  %s1102_s23 = smov [#allocation3]  }
  0x10   : > { %s1340_s21 = scalar_select %p1208_p10, 1, 0 }
  0x11   : > { %s266_s24 = sshll.u32 %s1102_s23, 4  ;;  %p955_p13 = pneg %p1213_p12  ;;  %s267_s24 = int_to_ptr.vmem [resolvable:$true] %s266_s24 }
  0x12   : > { %s1021_s25 = scalar_lea.vmem %s267_s24, 256  ;;  %p1029_p7 = scmp.lt.s32.totalorder %s267_s24, %s267_s24 }
  0x13   : > { %p956_p0 = pnand %p963_p11, %p955_p13  ;;  %p1022_p2 = scmp.ne.s32.totalorder %s267_s24, %s1021_s25 }
  0x14   : > { %p1030_p10 = scmp.lt.s32.totalorder %s1021_s25, %s1021_s25 }
  0x15   : > { %p1012_p1 = pneg %p956_p0 }
  0x16   : > { %p1031_p6 = por %p1030_p10, %p1029_p7 }
  0x17   : > { %p1024_p3 = pnand %p1022_p2, %p1012_p1 }
  0x19   : > { %p1025_p4 = pneg %p1024_p3 }
  0x1b   : > { %p1032_p8 = pnand %p1031_p6, %p1025_p4 }
  0x1d   : > { %1035 = shalt.err (!%p1032_p8)
}
  0x1e   : > { %s1103_s26 = smov 128   ;;  %s1104_s27 = smov 8  }
  0x1f   : > { %958 = dma.hbm_to_vmem [thread:$0]  (!%p956_p0), %s1329_s3, 256, %s267_s24, [#allocation4], %s1103_s26, %s1103_s26, %s1104_s27  }
  0x20   : > { %p885_p9 = scmp.ge.s32.totalorder %s1100_s12, 2 }
  0x22   : > { %291 = sbr.rel (%p885_p9) target bundleno = 44 (0x2c), region = 48 }
  0x27   : > { %294 = sbr.rel (!%p1198_p5) target bundleno = 44 (0x2c), region = 52  ;;  %s296_s14 = sand.u32 (%p1198_p5), 1, %s1096_s11  }
  0x28   : > { %s887_s16 = sshll.u32 (%p1198_p5), %s1100_s12, 3  ;;  %s886_s17 = sshll.u32 (%p1198_p5), %s296_s14, 4 }
  0x29   : > { %s300_s18 = scalar_lea.vmem (%p1198_p5), %s1326_s0, %s887_s16  ;;  %s298_s24 = scalar_lea.vmem (%p1198_p5), [#allocation2], %s886_s17 }
  0x2a   : > { %v331_v0 = vld [vmem:[%s300_s18] sm:$0xff] (%p1198_p5)  ;;  %v333_v1 = vld [vmem:[%s300_s18 + $0x10] sm:$0xff] (%p1198_p5) }
  0x2b   : > { %332 = vst [vmem:[%s298_s24] sm:$0xff] (%p1198_p5), %v331_v0  ;;  %334 = vst [vmem:[%s298_s24 + $0x8] sm:$0xff] (%p1198_p5), %v333_v1 }
  0x2c PF: > { %343 = sbr.rel (%p1213_p12) target bundleno = 926 (0x39e), region = 90  ;;  %s1237_s19 = sand.u32 (!%p1213_p12), 1, %s1092_s10  }
  0x2d   : > { %s889_s26 = sshll.u32 (!%p1213_p12), %s1237_s19, 4 }
  0x2e   : > { %s348_s27 = scalar_lea.vmem (!%p1213_p12), [#allocation2], %s889_s26 }
  0x31   : > { %1079 = dma.done.wait (%p963_p11), [#allocation4], 256  }
  0x32   : > { %1081 = vsyncadd (%p963_p11), [#allocation4], 4294967040  ;;  %v1105_v2 = vmov 0   ;;  %vm401_vm0 = vcmask 130048   ;;  %v386_v3 = vld [vmem:[%s348_s27 + $0x8] sm:$0xff]  ;;  %v385_v4 = vld [vmem:[%s348_s27] sm:$0xff] }
  0x33   : > { %1004 = vset.pattern.permute.xlu0 %v1105_v2  ;;  %1005 = vset.pattern.permute.xlu1 %v1105_v2  ;;  %v387_v5 = vld [vmem:[%s1327_s1] sm:$0xff]  ;;  %v390_v6 = vld [vmem:[%s1328_s2 + $0x8] sm:$0x3]  ;;  %vm499_vm1 = vcmask 80896   ;;  %vm506_vm2 = vcmask 1041408   ;;  %v1106_v34 = vmov 0.0  }
  0x34   : > { %921 = vmatprep.subr.mxu0 %v386_v3  ;;  %925 = vmatprep.mubr.msk.f32.mxu0 %vm401_vm0, %v387_v5  ;;  %v388_v7 = vld [vmem:[%s1327_s1 + $0x8] sm:$0x3]  ;;  %v389_v8 = vld [vmem:[%s1328_s2] sm:$0xff]  ;;  %vm1107_vm3 = vmmov 0   ;;  %vm770_vm4 = vcmask 1043456   ;;  %s891_s18 = sshll.u32 %s1237_s19, 2 }
  0x35   : > { %922 = vmatpush3.msra.mxu0 %v386_v3  ;;  %398 = vperm.xlu0 %1004, %v390_v6   ;;  %v590_v9 = vld [vmem:[%s1332_s6 + $0x8] sm:$0x3]  ;;  %v688_v10 = vld [vmem:[%s1334_s8] sm:$0xf]  ;;  %s903_s22 = sshll.u32 %s1180_s13, 6  ;;  %s384_s28 = scalar_lea.vmem [#allocation6], %s891_s18 }
  0x36   : > { %923 = vmatprep.subr.mxu0 %v385_v4  ;;  %v485_v11 = vld [vmem:[#allocation3] sm:$0xff]  ;;  %v488_v12 = vld [vmem:[%s1330_s4 + $0x8] sm:$0x3]  ;;  %s805_s29 = sshll.u32 %s384_s28, 4  ;;  %s803_s17 = scalar_lea.hbm %s1335_s9, %s903_s22  ;;  %s806_s29 = int_to_ptr.vmem [resolvable:$true] %s805_s29 }
  0x37   : > { %924 = vmatpush3.msra.mxu0 %v385_v4  ;;  %932 = vmatprep.mubr.msk.f32.mxu1 %vm499_vm1, %v485_v11  ;;  %v487_v13 = vld [vmem:[%s1330_s4] sm:$0xff]  ;;  %v486_v23 = vld [vmem:[#allocation3 + $0x8] sm:$0x3]  ;;  %s792_s23 = scalar_lea.sflag [#allocation5], %s1237_s19  ;;  %s1036_s25 = scalar_lea.vmem %s806_s29, 64 }
  0x38   : > { %926 = vmatmul.mubr.msk.f32.vlgmr.msra.gmra.mxu0 %vm401_vm0, %v388_v7  ;;  %496 = vperm.xlu1 %1005, %v488_v12   ;;  %v589_v14 = vld [vmem:[%s1332_s6] sm:$0xff]  ;;  %v588_v33 = vld [vmem:[%s1331_s5 + $0x8] sm:$0x3]  ;;  %p1037_p5 = scmp.ne.s32.totalorder %s806_s29, %s1036_s25  ;;  %p1342_p6 = scmp.ne.s32.totalorder %s1339_s20, 0 }
  0x39   : > { %393 = vperm.xlu0 %1004, %v389_v8   ;;  %v587_v24 = vld [vmem:[%s1331_s5] sm:$0xff]  ;;  %s1108_s24 = smov [#allocation6]  }
  0x3a   : > { %939 = vmatprep.mubr.msk.f32.mxu0 %vm499_vm1, %v587_v24  ;;  %v687_v43 = vld [vmem:[%s1333_s7] sm:$0xf]  ;;  %p1038_p10 = pnand %p1037_p5, %p1342_p6  ;;  %s1040_s26 = sshll.u32 %s1108_s24, 4  ;;  %s1041_s26 = int_to_ptr.vmem [resolvable:$false] %s1040_s26 }
  0x3b   : > { %s1042_s13 = scalar_lea.vmem %s1041_s26, 128  ;;  %p1043_p12 = scmp.lt.s32.totalorder %s806_s29, %s1041_s26 }
  0x3c   : > { %491 = vperm.xlu1 %1005, %v487_v13   ;;  %p1039_p11 = pneg %p1038_p10  ;;  %p1044_p13 = scmp.lt.s32.totalorder %s1042_s13, %s1036_s25 }
  0x3d   : > { %598 = vperm.xlu0 %1004, %v590_v9  }
  0x3e   : > { %p1045_p0 = por %p1044_p13, %p1043_p12 }
  0x40   : > { %593 = vperm.xlu1 %1005, %v589_v14   ;;  %p1046_p1 = pnand %p1045_p0, %p1039_p11 }
  0x41   : > { %691 = vperm.xlu0 %1004, %v688_v10  }
  0xb0   : > { %v399_v15 = vpop.permute.xlu0 %398 }
  0xb3   : > { %v497_v25 = vpop.permute.xlu1 %496 }
  0xb4   : > { %v394_v18 = vpop.permute.xlu0 %393 }
  0xb7   : > { %v492_v28 = vpop.permute.xlu1 %491 }
  0xb8   : > { %v599_v35 = vpop.permute.xlu0 %598 }
  0xbb   : > { %v594_v38 = vpop.permute.xlu1 %593 }
  0xbc   : > { %v692_v44 = vpop.permute.xlu0 %691 }
  0xf8   : > { %v927_v16 = vpop.f32.mrf.mxu0 }
  0xf9   : > { %v480_v17 = vadd.f32 %v927_v16, %v399_v15 }
  0xfa   : > { %v474_v19 = vpop.f32.mrf.mxu0 }
  0xfb   : > { %v484_v20 = vmax.f32 %v480_v17, 0.0  ;;  %v475_v21 = vadd.f32 %v474_v19, %v394_v18 }
  0xfd   : > { %v483_v22 = vmax.f32 %v475_v21, 0.0  ;;  %928 = vmatprep.subr.msk.mxu1 %vm506_vm2, %v484_v20 }
  0xfe   : > { %929 = vmatpush3.msk.msra.mxu1 %vm506_vm2, %v484_v20 }
  0xff   : > { %930 = vmatprep.subr.mxu1 %v483_v22 }
 0x100   : > { %931 = vmatpush3.msra.mxu1 %v483_v22 }
 0x101   : > { %933 = vmatmul.mubr.msk.f32.vlgmr.msra.gmra.mxu1 %vm499_vm1, %v486_v23  ;;  %942 = vmatprep.subr.mxu1 %v1106_v34 }
 0x102   : > { %946 = vmatprep.mubr.msk.f32.mxu1 %vm1107_vm3, %v1106_v34 }
 0x1c1   : > { %v934_v26 = vpop.f32.mrf.mxu1 }
 0x1c2   : > { %v582_v27 = vadd.f32 %v934_v26, %v497_v25 }
 0x1c3   : > { %v576_v29 = vpop.f32.mrf.mxu1 }
 0x1c4   : > { %v586_v30 = vmax.f32 %v582_v27, 0.0  ;;  %v577_v31 = vadd.f32 %v576_v29, %v492_v28 }
 0x1c6   : > { %v585_v32 = vmax.f32 %v577_v31, 0.0  ;;  %935 = vmatprep.subr.msk.mxu0 %vm506_vm2, %v586_v30 }
 0x1c7   : > { %936 = vmatpush3.msk.msra.mxu0 %vm506_vm2, %v586_v30 }
 0x1c8   : > { %937 = vmatprep.subr.mxu0 %v585_v32 }
 0x1c9   : > { %938 = vmatpush3.msra.mxu0 %v585_v32 }
 0x1ca   : > { %940 = vmatmul.mubr.msk.f32.vlgmr.msra.gmra.mxu0 %vm499_vm1, %v588_v33 }
 0x28a   : > { %v941_v36 = vpop.f32.mrf.mxu0 }
 0x28b   : > { %v682_v37 = vadd.f32 %v941_v36, %v599_v35 }
 0x28c   : > { %v676_v39 = vpop.f32.mrf.mxu0 }
 0x28d   : > { %v686_v40 = vmax.f32 %v682_v37, 0.0  ;;  %v677_v41 = vadd.f32 %v676_v39, %v594_v38 }
 0x28f   : > { %v685_v42 = vmax.f32 %v677_v41, 0.0  ;;  %943 = vmatpush3.msk.msra.mxu1 %vm506_vm2, %v686_v40 }
 0x290   : > { %944 = vmatprep.subr.mxu1 %v1106_v34 }
 0x291   : > { %945 = vmatpush3.msra.mxu1 %v685_v42 }
 0x292   : > { %947 = vmatmul.mubr.msk.f32.vlgmr.msra.gmra.mxu1 %vm499_vm1, %v687_v43 }
 0x352   : > { %v766_v45 = vpop.f32.mrf.mxu1 }
 0x353   : > { %v767_v46 = vadd.f32 %v766_v45, %v692_v44 }
 0x354   : > { %v948_v47 = vpop.f32.mrf.mxu1 }
 0x355   : > { %v771_v48 = vsel %vm770_vm4, %v767_v46, -inf }
 0x356   : > { %v772_v49 = vrot.slane %v771_v48, 4 }
 0x358   : > { %v773_v50 = vmax.f32 %v771_v48, %v772_v49 }
 0x35a   : > { %v774_v51 = vrot.slane %v773_v50, 2 }
 0x35c   : > { %v775_v52 = vmax.f32 %v773_v50, %v774_v51 }
 0x35e   : > { %v776_v53 = vrot.slane %v775_v52, 1 }
 0x360   : > { %v777_v54 = vmax.f32 %v775_v52, %v776_v53 }
 0x362   : > { %v778_v55 = vsub.f32 %v767_v46, %v777_v54 }
 0x364   : > { %v779_v56 = vmul.f32 1.442695, %v778_v55 }
 0x366   : > { %1006 = vpow2.f32 %v779_v56 }
 0x373   : > { %v1007_v57 = vpop.eup %1006 }
 0x374   : > { %v781_v58 = vsel %vm770_vm4, %v1007_v57, 0.0 }
 0x375   : > { %v782_v59 = vrot.slane %v781_v58, 4 }
 0x377   : > { %v783_v60 = vadd.f32 %v782_v59, %v781_v58 }
 0x379   : > { %v784_v61 = vrot.slane %v783_v60, 2 }
 0x37b   : > { %v785_v62 = vadd.f32 %v784_v61, %v783_v60 }
 0x37d   : > { %v786_v63 = vrot.slane %v785_v62, 1 }
 0x37f   : > { %v787_v0 = vadd.f32 %v786_v63, %v785_v62 }
 0x381   : > { %1008 = vrcp.f32 %v787_v0 }
 0x38e   : > { %v1009_v1 = vpop.eup %1008 }
 0x38f   : > { %v789_v2 = vmul.f32 %v1009_v1, %v1007_v57 }
 0x391   : > { %790 = vst [vmem:[%s384_s28] sm:$0xf] %v789_v2 }
 0x392   : > { %1049 = shalt.err (!%p1046_p1)
}
 0x393   : > { %s1050_s27 = scalar_lea.hbm %s803_s17, 64  ;;  %s1054_s22 = scalar_lea.hbm %s1335_s9, 128 }
 0x394   : > { %p1051_p2 = scmp.ne.s32.totalorder %s803_s17, %s1050_s27  ;;  %p1055_p7 = scmp.lt.s32.totalorder %s803_s17, %s1335_s9 }
 0x395   : > { %p1056_p8 = scmp.lt.s32.totalorder %s1054_s22, %s1050_s27 }
 0x396   : > { %p1052_p3 = pnand %p1051_p2, %p1342_p6 }
 0x397   : > { %p1057_p5 = por %p1056_p8, %p1055_p7 }
 0x398   : > { %p1053_p4 = pneg %p1052_p3 }
 0x39a   : > { %p1058_p10 = pnand %p1057_p5, %p1053_p4 }
 0x39c   : > { %1061 = shalt.err (!%p1058_p10)
}
 0x39d   : > { %953 = dma.vmem_to_hbm [thread:$0]  (%p1342_p6), %s806_s29, 64, %s803_s17, %s792_s23  }
 0x39e PF: > { %s817_s16 = sand.u32 1, %s1088_s30   ;;  %p1343_p11 = scmp.ne.s32.totalorder %s1340_s21, 0 }
 0x39f   : > { %s818_s25 = scalar_lea.sflag [#allocation5], %s817_s16 }
 0x3a0   : > { %p960_p12 = pnand %p885_p9, %p1343_p11 }
 0x3a2   : > { %p961_p13 = pneg %p960_p12 }
 0x3a4   : > { %1083 = dma.done.wait (%p961_p13), %s818_s25, 64  }
 0x3a5   : > { %1085 = vsyncadd (%p961_p13), %s818_s25, 4294967232  ;;  %s1344_s24 = sld [smem:[#allocation9_spill]]  ;;  %p20_p0 = scmp.ge.s32.totalorder %s1184_s15, 4  }
 0x3a6   : > { %s1345_s30 = smov %s1092_s10  ;;  %s1346_s10 = smov %s1096_s11 }
 0x3a7   : > { %s1348_s12 = smov %s1184_s15  ;;  %22 = sbr.rel (!%p20_p0) target bundleno = 4 (0x4), region = 139 }
 0x3ab   : > { %s1347_s11 = smov %s1344_s24 }
 0x3ac   :  { %823 = vsyncpa [#allocation4], 1 }
 0x3ad   :  { %825 = vsyncpa [#allocation4 + $0x1], 1 }
 0x3ae   :  { %826 = vsyncpa [#allocation5], 1 }
 0x3af   :  { %828 = vsyncpa [#allocation5 + $0x1], 1 }

</bundles_post_ra>
